<compile_context>
chip_gen: v5e
topology: v5e:2x2
jax: 0.10.0
libtpu: 0.0.40
codegen_flags: <defaults>
</compile_context>

<pallas_src>
import functools

import jax
import jax.numpy as jnp
from jax.experimental import pallas as pl
from jax.experimental.pallas import tpu as pltpu


HIDDEN = 512           # fixed by the module definition
COMPUTE_DTYPE = jnp.bfloat16


# ---------------------------------------------------------------------------
# Kernel
# ---------------------------------------------------------------------------
def _mlp_tail(h0_f32, w1_ref, wh_ref, out_ref):
    """ReLU -> L1 -> ReLU -> fused (means|log_var) head."""
    # TODO(synk): training-mode Dropout(0.5) (stochastic mask + 2x inverse scale)
    #             is not modeled; forward matches module.eval() semantics.
    h0 = jnp.maximum(h0_f32, 0.0).astype(w1_ref.dtype)
    h1 = jnp.dot(h0, w1_ref[...], preferred_element_type=jnp.float32)
    h1 = jnp.maximum(h1, 0.0).astype(wh_ref.dtype)
    # Single fused head matmul; output is lane-padded to a multiple of 128 so
    # the store below is a full-lane (unmasked) vst.
    out_ref[...] = jnp.dot(
        h1, wh_ref[...], preferred_element_type=jnp.float32
    ).astype(out_ref.dtype)


def _encoder_kernel_cond(x_ref, c_ref, w0x_ref, w0c_ref, w1_ref, wh_ref, out_ref):
    # h0 = [x, c] @ W0^T  computed without materializing the concat:
    h0 = jnp.dot(x_ref[...], w0x_ref[...], preferred_element_type=jnp.float32)
    h0 = h0 + jnp.dot(c_ref[...], w0c_ref[...], preferred_element_type=jnp.float32)
    _mlp_tail(h0, w1_ref, wh_ref, out_ref)


def _encoder_kernel_uncond(x_ref, w0x_ref, w1_ref, wh_ref, out_ref):
    h0 = jnp.dot(x_ref[...], w0x_ref[...], preferred_element_type=jnp.float32)
    _mlp_tail(h0, w1_ref, wh_ref, out_ref)


# ---------------------------------------------------------------------------
# One-time parameter preparation (NOT per forward call)
# ---------------------------------------------------------------------------
def prepare_params(torch_params, x_dim, conditional, dtype=COMPUTE_DTYPE):
    """Converts PyTorch-layout (out, in) weights into kernel-ready form, once.

    Returns dict with:
      w0x: (x_dim, 512)      bf16
      w0c: (cond_dim, 512)   bf16 (or None)
      w1 : (512, 512)        bf16
      wh : (512, HEAD_PAD)   bf16, fused [means | log_var] heads, zero-padded
      latent, head_pad
    """
    w0_t = jnp.asarray(torch_params["w0"]).T            # (input_size, 512)
    wm = jnp.asarray(torch_params["wm"])                 # (latent, 512)
    wv = jnp.asarray(torch_params["wv"])                 # (latent, 512)
    latent = wm.shape[0]

    head = jnp.concatenate([wm, wv], axis=0).T           # (512, 2*latent)
    head_pad = max(128, ((2 * latent + 127) // 128) * 128)
    if head.shape[1] < head_pad:
        head = jnp.pad(head, ((0, 0), (0, head_pad - head.shape[1])))

    prep = {
        "w0x": w0_t[:x_dim].astype(dtype),
        "w0c": w0_t[x_dim:].astype(dtype) if conditional else None,
        "w1": jnp.asarray(torch_params["w1"]).T.astype(dtype),
        "wh": head.astype(dtype),
        "latent": latent,
        "head_pad": head_pad,
    }
    return prep


# ---------------------------------------------------------------------------
# Forward
# ---------------------------------------------------------------------------
def _pick_batch_tile(B):
    # Big enough to fill the 256-wide MXU (v6e/v7x) when batch allows it.
    for tb in (256, 128, 64, 32, 16, 8):
        if B % tb == 0:
            return tb
    return B  # tiny / odd batch: single block


def encoder_forward(x, c, prep, *, conditional=True):
    """Runs the Encoder forward pass (eval-mode dropout = identity).

    Args:
      x: (B, x_dim) float
      c: (B, condition_dim) float or None
      prep: output of prepare_params()
    Returns:
      (means, log_vars), each (B, latent) float32.
    """
    B, x_dim = x.shape
    latent = prep["latent"]
    head_pad = prep["head_pad"]

    x = x.astype(COMPUTE_DTYPE)
    w0x, w1, wh = prep["w0x"], prep["w1"], prep["wh"]

    tb = _pick_batch_tile(B)
    nb = pl.cdiv(B, tb)

    row_spec = lambda cols: pl.BlockSpec((tb, cols), lambda i: (i, 0))
    full_spec = lambda shape: pl.BlockSpec(shape, lambda i: (0, 0))

    # Actual VMEM footprint is a few MiB (bf16 weights ~0.75 MiB, activations
    # tb*512*4 B); 16 MiB leaves ample double-buffer headroom on all chips.
    cparams = pltpu.CompilerParams(
        dimension_semantics=("parallel",),
        vmem_limit_bytes=16 << 20,
    )
    out_shape = jax.ShapeDtypeStruct((B, head_pad), jnp.float32)
    out_spec = pl.BlockSpec((tb, head_pad), lambda i: (i, 0))

    if conditional:
        assert c is not None
        c = c.astype(COMPUTE_DTYPE)
        w0c = prep["w0c"]
        out = pl.pallas_call(
            _encoder_kernel_cond,
            out_shape=out_shape,
            grid=(nb,),
            in_specs=[
                row_spec(x_dim),
                row_spec(c.shape[1]),
                full_spec(w0x.shape),
                full_spec(w0c.shape),
                full_spec(w1.shape),
                full_spec(wh.shape),
            ],
            out_specs=out_spec,
            compiler_params=cparams,
        )(x, c, w0x, w0c, w1, wh)
    else:
        out = pl.pallas_call(
            _encoder_kernel_uncond,
            out_shape=out_shape,
            grid=(nb,),
            in_specs=[
                row_spec(x_dim),
                full_spec(w0x.shape),
                full_spec(w1.shape),
                full_spec(wh.shape),
            ],
            out_specs=out_spec,
            compiler_params=cparams,
        )(x, w0x, w1, wh)

    means = out[:, :latent]
    log_vars = out[:, latent:2 * latent]
    return means, log_vars


# ---------------------------------------------------------------------------
# Test harness
# ---------------------------------------------------------------------------
def _init_params(key, x_dim, latent_size, conditional, condition_dim):
    input_size = x_dim + (condition_dim if conditional else 0)
    k0, k1, k2, k3 = jax.random.split(key, 4)

    def lin(k, out_f, in_f):  # PyTorch (out, in) layout, Kaiming-ish scale.
        return jax.random.normal(k, (out_f, in_f), jnp.float32) / jnp.sqrt(in_f)

    return {
        "w0": lin(k0, HIDDEN, input_size),
        "w1": lin(k1, HIDDEN, HIDDEN),
        "wm": lin(k2, latent_size, HIDDEN),
        "wv": lin(k3, latent_size, HIDDEN),
    }


def _reference_forward(x, c, params, conditional=True):
    # Pure f32 JAX reference (eval-mode dropout = identity).
    if conditional:
        x = jnp.concatenate([x, c], axis=-1)
    h = jnp.maximum(x @ params["w0"].T, 0.0)
    h = jnp.maximum(h @ params["w1"].T, 0.0)
    return h @ params["wm"].T, h @ params["wv"].T


if __name__ == "__main__":
    key = jax.random.PRNGKey(0)
    k_param, k_x, k_c = jax.random.split(key, 3)

    # Small shapes consistent with the module's forward.
    B, x_dim, cond_dim, latent = 8, 32, 16, 8
    conditional = True

    params = _init_params(k_param, x_dim, latent, conditional, cond_dim)
    prep = prepare_params(params, x_dim, conditional)   # one-time, outside forward

    x = jax.random.normal(k_x, (B, x_dim), jnp.float32)
    c = jax.random.normal(k_c, (B, cond_dim), jnp.float32)

    means, log_vars = encoder_forward(x, c, prep, conditional=conditional)
    jax.block_until_ready((means, log_vars))

    ref_means, ref_logvars = _reference_forward(x, c, params, conditional)
    assert means.shape == (B, latent) and log_vars.shape == (B, latent)
    # bf16 weights/activations with f32 accumulation -> loosened tolerance.
    assert jnp.allclose(means, ref_means, atol=5e-2, rtol=5e-2)
    assert jnp.allclose(log_vars, ref_logvars, atol=5e-2, rtol=5e-2)

    print("KERNEL_OK")
</pallas_src>

<mosaic_0001>
module attributes {stable_mosaic.version = 11 : i64} {
  func.func @_encoder_kernel_cond(%arg0: i32, %arg1: memref<8x32xbf16, #tpu.memory_space<vmem>>, %arg2: memref<8x16xbf16, #tpu.memory_space<vmem>>, %arg3: memref<32x512xbf16, #tpu.memory_space<vmem>>, %arg4: memref<16x512xbf16, #tpu.memory_space<vmem>>, %arg5: memref<512x512xbf16, #tpu.memory_space<vmem>>, %arg6: memref<512x128xbf16, #tpu.memory_space<vmem>>, %arg7: memref<8x128xf32, #tpu.memory_space<vmem>>) attributes {dimension_semantics = [#tpu.dimension_semantics<parallel>], iteration_bounds = array<i64: 1>, scalar_prefetch = 0 : i64, scratch_operands = 0 : i64, tpu.core_type = #tpu.core_type<tc>, window_params = [{transform_indices = @transform_0, window_bounds = array<i64: 8, 32>}, {transform_indices = @transform_1, window_bounds = array<i64: 8, 16>}, {pipeline_mode = #tpu.pipeline_mode<synchronous>, transform_indices = @transform_2, window_bounds = array<i64: 32, 512>}, {pipeline_mode = #tpu.pipeline_mode<synchronous>, transform_indices = @transform_3, window_bounds = array<i64: 16, 512>}, {pipeline_mode = #tpu.pipeline_mode<synchronous>, transform_indices = @transform_4, window_bounds = array<i64: 512, 512>}, {pipeline_mode = #tpu.pipeline_mode<synchronous>, transform_indices = @transform_5, window_bounds = array<i64: 512, 128>}, {transform_indices = @transform_6, window_bounds = array<i64: 8, 128>}]} {
    %c0 = arith.constant 0 : index
    %c0_0 = arith.constant 0 : index
    %0 = vector.load %arg1[%c0, %c0_0] : memref<8x32xbf16, #tpu.memory_space<vmem>>, vector<8x32xbf16>
    %c0_1 = arith.constant 0 : index
    %c0_2 = arith.constant 0 : index
    %1 = vector.load %arg3[%c0_1, %c0_2] : memref<32x512xbf16, #tpu.memory_space<vmem>>, vector<32x512xbf16>
    %cst = arith.constant dense<0.000000e+00> : vector<8x512xf32>
    %2 = tpu.matmul %0, %1, %cst {dimension_numbers = #tpu.dot_dimension_numbers<[1], [0], [0], [1], [0, 0, 1, 1], [], []>} : vector<8x32xbf16>, vector<32x512xbf16>, vector<8x512xf32> -> vector<8x512xf32>
    %c0_3 = arith.constant 0 : index
    %c0_4 = arith.constant 0 : index
    %3 = vector.load %arg2[%c0_3, %c0_4] : memref<8x16xbf16, #tpu.memory_space<vmem>>, vector<8x16xbf16>
    %c0_5 = arith.constant 0 : index
    %c0_6 = arith.constant 0 : index
    %4 = vector.load %arg4[%c0_5, %c0_6] : memref<16x512xbf16, #tpu.memory_space<vmem>>, vector<16x512xbf16>
    %cst_7 = arith.constant dense<0.000000e+00> : vector<8x512xf32>
    %5 = tpu.matmul %3, %4, %cst_7 {dimension_numbers = #tpu.dot_dimension_numbers<[1], [0], [0], [1], [0, 0, 1, 1], [], []>} : vector<8x16xbf16>, vector<16x512xbf16>, vector<8x512xf32> -> vector<8x512xf32>
    %6 = arith.addf %2, %5 : vector<8x512xf32>
    %cst_8 = arith.constant 0.000000e+00 : f32
    %7 = vector.broadcast %cst_8 : f32 to vector<8x512xf32>
    %8 = arith.maximumf %6, %7 : vector<8x512xf32>
    %9 = arith.truncf %8 : vector<8x512xf32> to vector<8x512xbf16>
    %c0_9 = arith.constant 0 : index
    %c0_10 = arith.constant 0 : index
    %10 = vector.load %arg5[%c0_9, %c0_10] : memref<512x512xbf16, #tpu.memory_space<vmem>>, vector<512x512xbf16>
    %cst_11 = arith.constant dense<0.000000e+00> : vector<8x512xf32>
    %11 = tpu.matmul %9, %10, %cst_11 {dimension_numbers = #tpu.dot_dimension_numbers<[1], [0], [0], [1], [0, 0, 1, 1], [], []>} : vector<8x512xbf16>, vector<512x512xbf16>, vector<8x512xf32> -> vector<8x512xf32>
    %cst_12 = arith.constant 0.000000e+00 : f32
    %12 = vector.broadcast %cst_12 : f32 to vector<8x512xf32>
    %13 = arith.maximumf %11, %12 : vector<8x512xf32>
    %14 = arith.truncf %13 : vector<8x512xf32> to vector<8x512xbf16>
    %c0_13 = arith.constant 0 : index
    %c0_14 = arith.constant 0 : index
    %15 = vector.load %arg6[%c0_13, %c0_14] : memref<512x128xbf16, #tpu.memory_space<vmem>>, vector<512x128xbf16>
    %cst_15 = arith.constant dense<0.000000e+00> : vector<8x128xf32>
    %16 = tpu.matmul %14, %15, %cst_15 {dimension_numbers = #tpu.dot_dimension_numbers<[1], [0], [0], [1], [0, 0, 1, 1], [], []>} : vector<8x512xbf16>, vector<512x128xbf16>, vector<8x128xf32> -> vector<8x128xf32>
    %c0_16 = arith.constant 0 : index
    %c0_17 = arith.constant 0 : index
    %17 = vector.load %arg7[%c0_16, %c0_17] : memref<8x128xf32, #tpu.memory_space<vmem>>, vector<8x128xf32>
    tpu.vector_store %arg7[%c0_16, %c0_17], %16 {strides = array<i32>} : memref<8x128xf32, #tpu.memory_space<vmem>>, vector<8x128xf32>,
    return
  }
  func.func @transform_0(%arg0: i32) -> (i32, i32) {
    %c0_i32 = arith.constant 0 : i32
    %c0_i32_0 = arith.constant 0 : i32
    return %arg0, %c0_i32 : i32, i32
  }
  func.func @transform_1(%arg0: i32) -> (i32, i32) {
    %c0_i32 = arith.constant 0 : i32
    %c0_i32_0 = arith.constant 0 : i32
    return %arg0, %c0_i32 : i32, i32
  }
  func.func @transform_2(%arg0: i32) -> (i32, i32) {
    %c0_i32 = arith.constant 0 : i32
    %c0_i32_0 = arith.constant 0 : i32
    %c0_i32_1 = arith.constant 0 : i32
    return %c0_i32, %c0_i32_0 : i32, i32
  }
  func.func @transform_3(%arg0: i32) -> (i32, i32) {
    %c0_i32 = arith.constant 0 : i32
    %c0_i32_0 = arith.constant 0 : i32
    %c0_i32_1 = arith.constant 0 : i32
    return %c0_i32, %c0_i32_0 : i32, i32
  }
  func.func @transform_4(%arg0: i32) -> (i32, i32) {
    %c0_i32 = arith.constant 0 : i32
    %c0_i32_0 = arith.constant 0 : i32
    %c0_i32_1 = arith.constant 0 : i32
    return %c0_i32, %c0_i32_0 : i32, i32
  }
  func.func @transform_5(%arg0: i32) -> (i32, i32) {
    %c0_i32 = arith.constant 0 : i32
    %c0_i32_0 = arith.constant 0 : i32
    %c0_i32_1 = arith.constant 0 : i32
    return %c0_i32, %c0_i32_0 : i32, i32
  }
  func.func @transform_6(%arg0: i32) -> (i32, i32) {
    %c0_i32 = arith.constant 0 : i32
    %c0_i32_0 = arith.constant 0 : i32
    return %arg0, %c0_i32 : i32, i32
  }
}

</mosaic_0001>

<bundles_post_ra>
// kernel: tpu_custom_call.1
= control target key start
LH: loop header
LB: loop body
LE: loop exit
PB: predicated region body
PF: predicated region fallthrough
CT: control target
= control target key end

     0   :  { %11 = vsyncpa [#allocation3], 0  ;;  %s2778_s0 = inlined_call_operand.hbm [shape: bf16[8,32], index: 0, kind: input, shape index: {}]   ;;  %s2779_s1 = inlined_call_operand.hbm [shape: bf16[8,16], index: 1, kind: input, shape index: {}]   ;;  %s2780_s2 = inlined_call_operand.hbm [shape: bf16[32,512], index: 2, kind: input, shape index: {}]   ;;  %s2781_s3 = inlined_call_operand.hbm [shape: bf16[16,512], index: 3, kind: input, shape index: {}]   ;;  %s2782_s4 = inlined_call_operand.hbm [shape: bf16[512,512], index: 4, kind: input, shape index: {}]   ;;  %s2783_s5 = inlined_call_operand.hbm [shape: bf16[512,128], index: 5, kind: input, shape index: {}]   ;;  %s2784_s6 = inlined_call_operand.hbm [shape: f32[8,128], index: 6, kind: output, shape index: {}]  }
   0x1   :  { %12 = vsyncpa [#allocation6], 0 }
   0x2   :  { %13 = vsyncpa [#allocation9], 0 }
   0x3   :  { %14 = vsyncpa [#allocation12], 0  ;;  %s32_s23 = sshll.u32 %s2779_s1, 4  ;;  %s33_s23 = int_to_ptr.hbm [resolvable:$true] %s32_s23 }
   0x4   :  { %15 = vsyncpa [#allocation4], 0  ;;  %s2679_s24 = smov [#allocation5]   ;;  %s55_s28 = sshll.u32 %s2781_s3, 4  ;;  %s56_s28 = int_to_ptr.hbm [resolvable:$true] %s55_s28 }
   0x5   :  { %s34_s25 = sshll.u32 %s2679_s24, 4  ;;  %s2680_s29 = smov [#allocation8]   ;;  %s35_s25 = int_to_ptr.vmem [resolvable:$true] %s34_s25 }
   0x6   :  { %37 = dma.hbm_to_vmem [thread:$0]  %s33_s23, 64, %s35_s25, [#allocation6]  }
   0x7   :  { %s57_s30 = sshll.u32 %s2680_s29, 4  ;;  %s21_s9 = sshll.u32 %s2778_s0, 4  ;;  %s58_s30 = int_to_ptr.vmem [resolvable:$true] %s57_s30  ;;  %s22_s9 = int_to_ptr.hbm [resolvable:$true] %s21_s9 }
   0x8   :  { %s2681_s1 = smov 256   ;;  %s2682_s10 = smov 16  }
   0x9   :  { %63 = dma.hbm_to_vmem [thread:$0]  %s56_s28, 512, %s58_s30, [#allocation9], %s2681_s1, %s2681_s1, %s2682_s10  }
   0xa   :  { %s42_s13 = sshll.u32 %s2780_s2, 4  ;;  %s2683_s14 = smov [#allocation2]   ;;  %s43_s13 = int_to_ptr.hbm [resolvable:$true] %s42_s13 }
   0xb   :  { %s23_s15 = sshll.u32 %s2683_s14, 4  ;;  %s2684_s3 = smov [#allocation7]   ;;  %s24_s15 = int_to_ptr.vmem [resolvable:$true] %s23_s15 }
   0xc   :  { %26 = dma.hbm_to_vmem [thread:$0]  %s22_s9, 64, %s24_s15, [#allocation3]  }
   0xd   :  { %s44_s16 = sshll.u32 %s2684_s3, 4  ;;  %s68_s0 = sshll.u32 %s2782_s4, 4  ;;  %s45_s16 = int_to_ptr.vmem [resolvable:$true] %s44_s16  ;;  %s69_s0 = int_to_ptr.hbm [resolvable:$true] %s68_s0 }
   0xe   :  { %50 = dma.hbm_to_vmem [thread:$0]  %s43_s13, 1024, %s45_s16, [#allocation6], %s2681_s1, %s2681_s1, %s2682_s10  }
   0xf   :  { %s81_s21 = sshll.u32 %s2783_s5, 4  ;;  %s2685_s22 = smov [#allocation10]   ;;  %s82_s21 = int_to_ptr.hbm [resolvable:$true] %s81_s21 }
  0x10   :  { %s70_s2 = sshll.u32 %s2685_s22, 4  ;;  %s2686_s23 = smov [#allocation11]   ;;  %s71_s2 = int_to_ptr.vmem [resolvable:$true] %s70_s2 }
  0x11   :  { %76 = dma.hbm_to_vmem [thread:$0]  %s69_s0, 16384, %s71_s2, [#allocation9], %s2681_s1, %s2681_s1, %s2682_s10  }
  0x12   :  { %s83_s24 = sshll.u32 %s2686_s23, 4  ;;  %s2687_s25 = smov 64   ;;  %s84_s24 = int_to_ptr.vmem [resolvable:$true] %s83_s24 }
  0x13   :  { %s2688_s26 = smov 4  }
  0x14   :  { %89 = dma.hbm_to_vmem [thread:$0]  %s82_s21, 4096, %s84_s24, [#allocation12], %s2687_s25, %s2687_s25, %s2688_s26  }
  0x15   :  { %2669 = dma.done.wait [#allocation3], 64  }
  0x16   :  { %2670 = vsyncadd [#allocation3], 4294967232 }
  0x17   :  { %2671 = dma.done.wait [#allocation6], 1088  }
  0x18   :  { %2672 = vsyncadd [#allocation6], 4294966208 }
  0x19   :  { %2673 = dma.done.wait [#allocation9], 16896  }
  0x1a   :  { %2674 = vsyncadd [#allocation9], 4294950400 }
  0x1b   :  { %2675 = dma.done.wait [#allocation12], 4096  }
  0x1c   :  { %2676 = vsyncadd [#allocation12], 4294963200  ;;  %vm149_vm0 = vcmask 130048   ;;  %v1624_v0 = vld [vmem:[#allocation8] sm:$0xf]  ;;  %vm245_vm1 = vcmask 261120  }
  0x1d   :  { %v2328_v1 = vld [vmem:[#allocation8 + $0xc] sm:$0xf0]  ;;  %v2326_v2 = vld [vmem:[#allocation8 + $0x4] sm:$0xf]  ;;  %v1626_v4 = vld [vmem:[#allocation8 + $0x10] sm:$0xf0] }
  0x1e   :  { %v1625_v3 = vor.u32 %v2328_v1, %v1624_v0  ;;  %v1632_v5 = vld [vmem:[#allocation8 + $0x8] sm:$0xf]  ;;  %v2329_v6 = vld [vmem:[#allocation8 + $0x14] sm:$0xf0]  ;;  %v1629_v7 = vor.u32 %v2326_v2, %v1626_v4  ;;  %v2327_v9 = vld [vmem:[#allocation8 + $0xc] sm:$0xf] }
  0x1f   :  { %v1633_v8 = vor.u32 %v2329_v6, %v1632_v5  ;;  %v1634_v10 = vld [vmem:[#allocation8 + $0x18] sm:$0xf0]  ;;  %v1660_v13 = vld [vmem:[#allocation7 + $0x20] sm:$0xf]  ;;  %v2324_v14 = vld [vmem:[#allocation7 + $0x2c] sm:$0xf0] }
  0x20   :  { %v124_v11 = vld [vmem:[#allocation5] sm:$0xf]  ;;  %160 = vmatpush.bf16.msra.mxu0 %v1625_v3  ;;  %v1637_v12 = vor.u32 %v2327_v9, %v1634_v10  ;;  %v2322_v15 = vld [vmem:[#allocation7 + $0x24] sm:$0xf]  ;;  %173 = vmatpush.bf16.msra.mxu1 %v1629_v7  ;;  %v1661_v16 = vor.u32 %v2324_v14, %v1660_v13  ;;  %v1662_v17 = vld [vmem:[#allocation7 + $0x30] sm:$0xf0] }
  0x21   :  { %186 = vmatpush.bf16.msra.mxu2 %v1633_v8  ;;  %v1668_v18 = vld [vmem:[#allocation7 + $0x28] sm:$0xf]  ;;  %v2325_v19 = vld [vmem:[#allocation7 + $0x34] sm:$0xf0]  ;;  %v1665_v20 = vor.u32 %v2322_v15, %v1662_v17  ;;  %v2323_v22 = vld [vmem:[#allocation7 + $0x2c] sm:$0xf] }
  0x22   :  { %199 = vmatpush.bf16.msra.mxu3 %v1637_v12  ;;  %v1669_v21 = vor.u32 %v2325_v19, %v1668_v18  ;;  %v1670_v23 = vld [vmem:[#allocation7 + $0x38] sm:$0xf0]  ;;  %v1644_v24 = vld [vmem:[#allocation7] sm:$0xf]  ;;  %v2320_v26 = vld [vmem:[#allocation7 + $0xc] sm:$0xf0] }
  0x23   :  { %1638 = vmatmul.msk.bf16.vlgmr.msra.gmra.mxu0 %vm149_vm0, %v124_v11  ;;  %v1673_v25 = vor.u32 %v2323_v22, %v1670_v23  ;;  %v2318_v27 = vld [vmem:[#allocation7 + $0x4] sm:$0xf]  ;;  %v1646_v28 = vld [vmem:[#allocation7 + $0x10] sm:$0xf0]  ;;  %1639 = vmatmul.msk.bf16.vlgmr.msra.gmra.mxu1 %vm149_vm0, %v124_v11  ;;  %v1652_v29 = vld [vmem:[#allocation7 + $0x8] sm:$0xf]  ;;  %v1645_v32 = vor.u32 %v2320_v26, %v1644_v24 }
  0x24   :  { %1640 = vmatmul.msk.bf16.vlgmr.msra.gmra.mxu2 %vm149_vm0, %v124_v11  ;;  %v2321_v30 = vld [vmem:[#allocation7 + $0x14] sm:$0xf0]  ;;  %v2319_v31 = vld [vmem:[#allocation7 + $0xc] sm:$0xf]  ;;  %255 = vmatpush.bf16.msrb.mxu0 %v1661_v16  ;;  %v1654_v33 = vld [vmem:[#allocation7 + $0x18] sm:$0xf0]  ;;  %v1649_v35 = vor.u32 %v2318_v27, %v1646_v28 }
  0x25   :  { %1641 = vmatmul.msk.bf16.vlgmr.msra.gmra.mxu3 %vm149_vm0, %v124_v11  ;;  %v1792_v34 = vld [vmem:[#allocation10 + $0xe0] sm:$0xf]  ;;  %268 = vmatpush.bf16.msrb.mxu1 %v1665_v20  ;;  %v1653_v36 = vor.u32 %v2321_v30, %v1652_v29  ;;  %v2360_v37 = vld [vmem:[#allocation10 + $0xec] sm:$0xf0]  ;;  %v1657_v40 = vor.u32 %v2319_v31, %v1654_v33  ;;  %v115_v3 = vld [vmem:[#allocation2] sm:$0xf] }
  0x26   :  { %281 = vmatpush.bf16.msrb.mxu2 %v1669_v21  ;;  %v1920_v38 = vld [vmem:[#allocation10 + $0x1e0] sm:$0xf]  ;;  %v2392_v39 = vld [vmem:[#allocation10 + $0x1ec] sm:$0xf0]  ;;  %294 = vmatpush.bf16.msrb.mxu3 %v1673_v25  ;;  %v1793_v41 = vor.u32 %v2360_v37, %v1792_v34  ;;  %s2689_s4 = smov [#allocation13]   ;;  %s1609_s29 = sshll.u32 %s2784_s6, 4  ;;  %s1610_s29 = int_to_ptr.hbm [resolvable:$true] %s1609_s29 }
  0x27   :  { %v1776_v42 = vld [vmem:[#allocation10 + $0xc0] sm:$0xf]  ;;  %v2356_v43 = vld [vmem:[#allocation10 + $0xcc] sm:$0xf0]  ;;  %v1921_v44 = vor.u32 %v2392_v39, %v1920_v38  ;;  %s1607_s5 = sshll.u32 %s2689_s4, 4  ;;  %s1608_s5 = int_to_ptr.vmem [resolvable:$true] %s1607_s5 }
  0x28   :  { %v1904_v45 = vld [vmem:[#allocation10 + $0x1c0] sm:$0xf]  ;;  %v2424_v47 = vld [vmem:[#allocation10 + $0x2ec] sm:$0xf0]  ;;  %256 = vmatpush.bf16.msrb.mxu0 %v1645_v32  ;;  %v1777_v53 = vor.u32 %v2356_v43, %v1776_v42 }
  0x29   :  { %v2048_v46 = vld [vmem:[#allocation10 + $0x2e0] sm:$0xf]  ;;  %v2388_v48 = vld [vmem:[#allocation10 + $0x1cc] sm:$0xf0]  ;;  %269 = vmatpush.bf16.msrb.mxu1 %v1649_v35 }
  0x2a   :  { %v2049_v49 = vor.u32 %v2424_v47, %v2048_v46  ;;  %v2176_v50 = vld [vmem:[#allocation10 + $0x3e0] sm:$0xf]  ;;  %v2456_v51 = vld [vmem:[#allocation10 + $0x3ec] sm:$0xf0]  ;;  %282 = vmatpush.bf16.msrb.mxu2 %v1653_v36  ;;  %295 = vmatpush.bf16.msrb.mxu3 %v1657_v40  ;;  %v1905_v57 = vor.u32 %v2388_v48, %v1904_v45 }
  0x2b   :  { %v2177_v52 = vor.u32 %v2456_v51, %v2176_v50  ;;  %v2032_v54 = vld [vmem:[#allocation10 + $0x2c0] sm:$0xf]  ;;  %v2420_v55 = vld [vmem:[#allocation10 + $0x2cc] sm:$0xf0] }
  0x2c   :  { %1077 = vmatpush.bf16.msra.mxu0 %v1793_v41  ;;  %v2160_v56 = vld [vmem:[#allocation10 + $0x3c0] sm:$0xf]  ;;  %v2033_v58 = vor.u32 %v2420_v55, %v2032_v54  ;;  %v2452_v59 = vld [vmem:[#allocation10 + $0x3cc] sm:$0xf0] }
  0x2d   :  { %1090 = vmatpush.bf16.msra.mxu1 %v1921_v44  ;;  %v2161_v60 = vor.u32 %v2452_v59, %v2160_v56  ;;  %v1760_v61 = vld [vmem:[#allocation10 + $0xa0] sm:$0xf]  ;;  %v2352_v62 = vld [vmem:[#allocation10 + $0xac] sm:$0xf0] }
  0x2e   :  { %1103 = vmatpush.bf16.msra.mxu2 %v2049_v49  ;;  %1116 = vmatpush.bf16.msra.mxu3 %v2177_v52  ;;  %v1888_v63 = vld [vmem:[#allocation10 + $0x1a0] sm:$0xf]  ;;  %v2384_v0 = vld [vmem:[#allocation10 + $0x1ac] sm:$0xf0]  ;;  %v1761_v6 = vor.u32 %v2352_v62, %v1760_v61  ;;  %v2358_v61 = vld [vmem:[#allocation10 + $0xe4] sm:$0xf] }
  0x2f   :  { %v2016_v1 = vld [vmem:[#allocation10 + $0x2a0] sm:$0xf]  ;;  %v2416_v2 = vld [vmem:[#allocation10 + $0x2ac] sm:$0xf0]  ;;  %v1889_v7 = vor.u32 %v2384_v0, %v1888_v63  ;;  %v1794_v62 = vld [vmem:[#allocation10 + $0xf0] sm:$0xf0] }
  0x30   :  { %1078 = vmatpush.bf16.msra.mxu0 %v1777_v53  ;;  %v2144_v4 = vld [vmem:[#allocation10 + $0x3a0] sm:$0xf]  ;;  %v2448_v5 = vld [vmem:[#allocation10 + $0x3ac] sm:$0xf0]  ;;  %v2017_v11 = vor.u32 %v2416_v2, %v2016_v1  ;;  %v2390_v63 = vld [vmem:[#allocation10 + $0x1e4] sm:$0xf] }
  0x31   :  { %1091 = vmatpush.bf16.msra.mxu1 %v1905_v57  ;;  %v1744_v8 = vld [vmem:[#allocation10 + $0x80] sm:$0xf]  ;;  %v2348_v9 = vld [vmem:[#allocation10 + $0x8c] sm:$0xf0]  ;;  %v2145_v13 = vor.u32 %v2448_v5, %v2144_v4  ;;  %v1922_v1 = vld [vmem:[#allocation10 + $0x1f0] sm:$0xf0] }
  0x32   :  { %1104 = vmatpush.bf16.msra.mxu2 %v2033_v58  ;;  %1117 = vmatpush.bf16.msra.mxu3 %v2161_v60  ;;  %v1872_v10 = vld [vmem:[#allocation10 + $0x180] sm:$0xf]  ;;  %v2380_v12 = vld [vmem:[#allocation10 + $0x18c] sm:$0xf0]  ;;  %v1745_v18 = vor.u32 %v2348_v9, %v1744_v8  ;;  %v1797_v8 = vor.u32 %v2358_v61, %v1794_v62  ;;  %v1925_v9 = vor.u32 %v2390_v63, %v1922_v1  ;;  %v1714_v61 = vld [vmem:[#allocation10 + $0x50] sm:$0xf0] }
  0x33   :  { %1674 = vmatmul.msk.bf16.vlgmr.msrb.gmra.mxu0 %vm245_vm1, %v115_v3  ;;  %v2000_v14 = vld [vmem:[#allocation10 + $0x280] sm:$0xf]  ;;  %v2412_v15 = vld [vmem:[#allocation10 + $0x28c] sm:$0xf0]  ;;  %1675 = vmatmul.msk.bf16.vlgmr.msrb.gmra.mxu1 %vm245_vm1, %v115_v3  ;;  %v1873_v19 = vor.u32 %v2380_v12, %v1872_v10  ;;  %v2354_v10 = vld [vmem:[#allocation10 + $0xc4] sm:$0xf] }
  0x34   :  { %1676 = vmatmul.msk.bf16.vlgmr.msrb.gmra.mxu2 %vm245_vm1, %v115_v3  ;;  %v2128_v16 = vld [vmem:[#allocation10 + $0x380] sm:$0xf]  ;;  %v2444_v17 = vld [vmem:[#allocation10 + $0x38c] sm:$0xf0]  ;;  %1079 = vmatpush.bf16.msra.mxu0 %v1761_v6  ;;  %v2001_v23 = vor.u32 %v2412_v15, %v2000_v14  ;;  %v1906_v14 = vld [vmem:[#allocation10 + $0x1d0] sm:$0xf0] }
  0x35   :  { %1677 = vmatmul.msk.bf16.vlgmr.msrb.gmra.mxu3 %vm245_vm1, %v115_v3  ;;  %1092 = vmatpush.bf16.msra.mxu1 %v1889_v7  ;;  %v1728_v20 = vld [vmem:[#allocation10 + $0x60] sm:$0xf]  ;;  %v2344_v21 = vld [vmem:[#allocation10 + $0x6c] sm:$0xf0]  ;;  %v2129_v25 = vor.u32 %v2444_v17, %v2128_v16  ;;  %v2370_v62 = vld [vmem:[#allocation10 + $0x144] sm:$0xf] }
  0x36   :  { %1105 = vmatpush.bf16.msra.mxu2 %v2017_v11  ;;  %v1856_v22 = vld [vmem:[#allocation10 + $0x160] sm:$0xf]  ;;  %1118 = vmatpush.bf16.msra.mxu3 %v2145_v13  ;;  %v2376_v24 = vld [vmem:[#allocation10 + $0x16c] sm:$0xf0]  ;;  %v1729_v30 = vor.u32 %v2344_v21, %v1728_v20  ;;  %v1778_v11 = vld [vmem:[#allocation10 + $0xd0] sm:$0xf0] }
  0x37   :  { %v1984_v26 = vld [vmem:[#allocation10 + $0x260] sm:$0xf]  ;;  %v2408_v27 = vld [vmem:[#allocation10 + $0x26c] sm:$0xf0]  ;;  %v1857_v31 = vor.u32 %v2376_v24, %v1856_v22  ;;  %v2386_v13 = vld [vmem:[#allocation10 + $0x1c4] sm:$0xf]  ;;  %v1781_v16 = vor.u32 %v2354_v10, %v1778_v11 }
  0x38   :  { %v2112_v28 = vld [vmem:[#allocation10 + $0x360] sm:$0xf]  ;;  %v2440_v29 = vld [vmem:[#allocation10 + $0x36c] sm:$0xf0]  ;;  %1080 = vmatpush.bf16.msra.mxu0 %v1745_v18  ;;  %v1985_v35 = vor.u32 %v2408_v27, %v1984_v26  ;;  %v1909_v17 = vor.u32 %v2386_v13, %v1906_v14  ;;  %v2422_v18 = vld [vmem:[#allocation10 + $0x2e4] sm:$0xf] }
  0x39   :  { %1093 = vmatpush.bf16.msra.mxu1 %v1873_v19  ;;  %v1712_v32 = vld [vmem:[#allocation10 + $0x40] sm:$0xf]  ;;  %v2340_v33 = vld [vmem:[#allocation10 + $0x4c] sm:$0xf0]  ;;  %v2113_v37 = vor.u32 %v2440_v29, %v2112_v28  ;;  %v2050_v19 = vld [vmem:[#allocation10 + $0x2f0] sm:$0xf0] }
  0x3a   :  { %1106 = vmatpush.bf16.msra.mxu2 %v2001_v23  ;;  %v1840_v34 = vld [vmem:[#allocation10 + $0x140] sm:$0xf]  ;;  %1119 = vmatpush.bf16.msra.mxu3 %v2129_v25  ;;  %v2372_v36 = vld [vmem:[#allocation10 + $0x14c] sm:$0xf0]  ;;  %v1713_v42 = vor.u32 %v2340_v33, %v1712_v32  ;;  %v2454_v20 = vld [vmem:[#allocation10 + $0x3e4] sm:$0xf]  ;;  %v2053_v21 = vor.u32 %v2422_v18, %v2050_v19 }
  0x3b   :  { %v1968_v38 = vld [vmem:[#allocation10 + $0x240] sm:$0xf]  ;;  %v2404_v39 = vld [vmem:[#allocation10 + $0x24c] sm:$0xf0]  ;;  %v1841_v43 = vor.u32 %v2372_v36, %v1840_v34  ;;  %v2178_v22 = vld [vmem:[#allocation10 + $0x3f0] sm:$0xf0] }
  0x3c   :  { %v2096_v40 = vld [vmem:[#allocation10 + $0x340] sm:$0xf]  ;;  %v2436_v41 = vld [vmem:[#allocation10 + $0x34c] sm:$0xf0]  ;;  %1081 = vmatpush.bf16.msra.mxu0 %v1729_v30  ;;  %v1969_v47 = vor.u32 %v2404_v39, %v1968_v38  ;;  %v2181_v23 = vor.u32 %v2454_v20, %v2178_v22  ;;  %v2350_v24 = vld [vmem:[#allocation10 + $0xa4] sm:$0xf] }
  0x3d   :  { %1094 = vmatpush.bf16.msra.mxu1 %v1857_v31  ;;  %v1696_v44 = vld [vmem:[#allocation10 + $0x20] sm:$0xf]  ;;  %v2336_v45 = vld [vmem:[#allocation10 + $0x2c] sm:$0xf0]  ;;  %v2097_v49 = vor.u32 %v2436_v41, %v2096_v40  ;;  %v1762_v25 = vld [vmem:[#allocation10 + $0xb0] sm:$0xf0] }
  0x3e   :  { %1107 = vmatpush.bf16.msra.mxu2 %v1985_v35  ;;  %v1824_v46 = vld [vmem:[#allocation10 + $0x120] sm:$0xf]  ;;  %1120 = vmatpush.bf16.msra.mxu3 %v2113_v37  ;;  %v2368_v48 = vld [vmem:[#allocation10 + $0x12c] sm:$0xf0]  ;;  %v1697_v54 = vor.u32 %v2336_v45, %v1696_v44  ;;  %v2382_v26 = vld [vmem:[#allocation10 + $0x1a4] sm:$0xf]  ;;  %v1765_v27 = vor.u32 %v2350_v24, %v1762_v25 }
  0x3f   :  { %v1952_v50 = vld [vmem:[#allocation10 + $0x220] sm:$0xf]  ;;  %v2400_v51 = vld [vmem:[#allocation10 + $0x22c] sm:$0xf0]  ;;  %v1825_v56 = vor.u32 %v2368_v48, %v1824_v46  ;;  %v1890_v28 = vld [vmem:[#allocation10 + $0x1b0] sm:$0xf0] }
  0x40   :  { %v2080_v52 = vld [vmem:[#allocation10 + $0x320] sm:$0xf]  ;;  %v2432_v53 = vld [vmem:[#allocation10 + $0x32c] sm:$0xf0]  ;;  %1082 = vmatpush.bf16.msra.mxu0 %v1713_v42  ;;  %v1953_v60 = vor.u32 %v2400_v51, %v1952_v50  ;;  %v2418_v29 = vld [vmem:[#allocation10 + $0x2c4] sm:$0xf]  ;;  %v1893_v31 = vor.u32 %v2382_v26, %v1890_v28 }
  0x41   :  { %v1680_v55 = vld [vmem:[#allocation10] sm:$0xf]  ;;  %1095 = vmatpush.bf16.msra.mxu1 %v1841_v43  ;;  %v2332_v57 = vld [vmem:[#allocation10 + $0xc] sm:$0xf0]  ;;  %v2081_v0 = vor.u32 %v2432_v53, %v2080_v52  ;;  %v2034_v30 = vld [vmem:[#allocation10 + $0x2d0] sm:$0xf0] }
  0x42   :  { %1108 = vmatpush.bf16.msra.mxu2 %v1969_v47  ;;  %v1808_v58 = vld [vmem:[#allocation10 + $0x100] sm:$0xf]  ;;  %v2364_v59 = vld [vmem:[#allocation10 + $0x10c] sm:$0xf0]  ;;  %1121 = vmatpush.bf16.msra.mxu3 %v2097_v49  ;;  %v1681_v4 = vor.u32 %v2332_v57, %v1680_v55  ;;  %v2037_v32 = vor.u32 %v2418_v29, %v2034_v30  ;;  %v2450_v33 = vld [vmem:[#allocation10 + $0x3c4] sm:$0xf] }
  0x43   :  { %v1936_v2 = vld [vmem:[#allocation10 + $0x200] sm:$0xf]  ;;  %v2396_v3 = vld [vmem:[#allocation10 + $0x20c] sm:$0xf0]  ;;  %v1809_v7 = vor.u32 %v2364_v59, %v1808_v58  ;;  %v2162_v34 = vld [vmem:[#allocation10 + $0x3d0] sm:$0xf0] }
  0x44   :  { %1083 = vmatpush.bf16.msra.mxu0 %v1697_v54  ;;  %v2064_v5 = vld [vmem:[#allocation10 + $0x300] sm:$0xf]  ;;  %v2428_v6 = vld [vmem:[#allocation10 + $0x30c] sm:$0xf0]  ;;  %v1937_v12 = vor.u32 %v2396_v3, %v1936_v2  ;;  %v2165_v35 = vor.u32 %v2450_v33, %v2162_v34  ;;  %v2346_v36 = vld [vmem:[#allocation10 + $0x84] sm:$0xf] }
  0x45   :  { %1096 = vmatpush.bf16.msra.mxu1 %v1825_v56  ;;  %v2065_v15 = vor.u32 %v2428_v6, %v2064_v5  ;;  %v1746_v37 = vld [vmem:[#allocation10 + $0x90] sm:$0xf0]  ;;  %v2378_v38 = vld [vmem:[#allocation10 + $0x184] sm:$0xf] }
  0x46   :  { %1109 = vmatpush.bf16.msra.mxu2 %v1953_v60  ;;  %1122 = vmatpush.bf16.msra.mxu3 %v2081_v0  ;;  %v1749_v39 = vor.u32 %v2346_v36, %v1746_v37  ;;  %v1874_v40 = vld [vmem:[#allocation10 + $0x190] sm:$0xf0]  ;;  %v2414_v42 = vld [vmem:[#allocation10 + $0x2a4] sm:$0xf] }
  0x47   :  { %v1877_v41 = vor.u32 %v2378_v38, %v1874_v40  ;;  %v2018_v43 = vld [vmem:[#allocation10 + $0x2b0] sm:$0xf0]  ;;  %v2446_v44 = vld [vmem:[#allocation10 + $0x3a4] sm:$0xf] }
  0x48   :  { %1084 = vmatpush.bf16.msra.mxu0 %v1681_v4  ;;  %v2021_v45 = vor.u32 %v2414_v42, %v2018_v43  ;;  %v2146_v46 = vld [vmem:[#allocation10 + $0x3b0] sm:$0xf0]  ;;  %v2342_v48 = vld [vmem:[#allocation10 + $0x64] sm:$0xf] }
  0x49   :  { %1097 = vmatpush.bf16.msra.mxu1 %v1809_v7  ;;  %v2149_v47 = vor.u32 %v2446_v44, %v2146_v46  ;;  %v1730_v49 = vld [vmem:[#allocation10 + $0x70] sm:$0xf0]  ;;  %v2374_v50 = vld [vmem:[#allocation10 + $0x164] sm:$0xf] }
  0x4a   :  { %1110 = vmatpush.bf16.msra.mxu2 %v1937_v12  ;;  %1123 = vmatpush.bf16.msra.mxu3 %v2065_v15  ;;  %v1733_v51 = vor.u32 %v2342_v48, %v1730_v49  ;;  %v1858_v52 = vld [vmem:[#allocation10 + $0x170] sm:$0xf0]  ;;  %v2410_v53 = vld [vmem:[#allocation10 + $0x284] sm:$0xf]  ;;  %v1800_v49 = vld [vmem:[#allocation10 + $0xe8] sm:$0xf] }
  0x4b   :  { %v2002_v54 = vld [vmem:[#allocation10 + $0x290] sm:$0xf0]  ;;  %v1861_v55 = vor.u32 %v2374_v50, %v1858_v52  ;;  %v2442_v57 = vld [vmem:[#allocation10 + $0x384] sm:$0xf]  ;;  %v2361_v50 = vld [vmem:[#allocation10 + $0xf4] sm:$0xf0] }
  0x4c   :  { %1129 = vmatpush.bf16.msrb.mxu0 %v1797_v8  ;;  %v2005_v56 = vor.u32 %v2410_v53, %v2002_v54  ;;  %v2130_v58 = vld [vmem:[#allocation10 + $0x390] sm:$0xf0]  ;;  %v2338_v60 = vld [vmem:[#allocation10 + $0x44] sm:$0xf]  ;;  %v1928_v52 = vld [vmem:[#allocation10 + $0x1e8] sm:$0xf] }
  0x4d   :  { %1142 = vmatpush.bf16.msrb.mxu1 %v1925_v9  ;;  %v2133_v59 = vor.u32 %v2442_v57, %v2130_v58  ;;  %v1717_v63 = vor.u32 %v2338_v60, %v1714_v61  ;;  %v1842_v0 = vld [vmem:[#allocation10 + $0x150] sm:$0xf0]  ;;  %v2406_v2 = vld [vmem:[#allocation10 + $0x264] sm:$0xf]  ;;  %v2393_v53 = vld [vmem:[#allocation10 + $0x1f4] sm:$0xf0] }
  0x4e   :  { %1155 = vmatpush.bf16.msrb.mxu2 %v2053_v21  ;;  %1168 = vmatpush.bf16.msrb.mxu3 %v2181_v23  ;;  %v1845_v1 = vor.u32 %v2370_v62, %v1842_v0  ;;  %v1986_v3 = vld [vmem:[#allocation10 + $0x270] sm:$0xf0]  ;;  %v2438_v4 = vld [vmem:[#allocation10 + $0x364] sm:$0xf]  ;;  %v1929_v58 = vor.u32 %v2393_v53, %v1928_v52  ;;  %v2357_v60 = vld [vmem:[#allocation10 + $0xd4] sm:$0xf0] }
  0x4f   :  { %v1989_v5 = vor.u32 %v2406_v2, %v1986_v3  ;;  %v2114_v6 = vld [vmem:[#allocation10 + $0x370] sm:$0xf0]  ;;  %v2334_v8 = vld [vmem:[#allocation10 + $0x24] sm:$0xf]  ;;  %v1912_v62 = vld [vmem:[#allocation10 + $0x1c8] sm:$0xf] }
  0x50   :  { %1130 = vmatpush.bf16.msrb.mxu0 %v1781_v16  ;;  %v2117_v7 = vor.u32 %v2438_v4, %v2114_v6  ;;  %v1698_v9 = vld [vmem:[#allocation10 + $0x30] sm:$0xf0]  ;;  %v2366_v10 = vld [vmem:[#allocation10 + $0x124] sm:$0xf]  ;;  %v2425_v6 = vld [vmem:[#allocation10 + $0x2f4] sm:$0xf0] }
  0x51   :  { %1143 = vmatpush.bf16.msrb.mxu1 %v1909_v17  ;;  %v1701_v11 = vor.u32 %v2334_v8, %v1698_v9  ;;  %v1826_v12 = vld [vmem:[#allocation10 + $0x130] sm:$0xf0]  ;;  %v2402_v14 = vld [vmem:[#allocation10 + $0x244] sm:$0xf]  ;;  %v2136_v52 = vld [vmem:[#allocation10 + $0x388] sm:$0xf] }
  0x52   :  { %1156 = vmatpush.bf16.msrb.mxu2 %v2037_v32  ;;  %1169 = vmatpush.bf16.msrb.mxu3 %v2165_v35  ;;  %v1829_v13 = vor.u32 %v2366_v10, %v1826_v12  ;;  %v1970_v15 = vld [vmem:[#allocation10 + $0x250] sm:$0xf0]  ;;  %v2434_v16 = vld [vmem:[#allocation10 + $0x344] sm:$0xf]  ;;  %v1768_v12 = vld [vmem:[#allocation10 + $0xa8] sm:$0xf] }
  0x53   :  { %v1973_v17 = vor.u32 %v2402_v14, %v1970_v15  ;;  %v2098_v18 = vld [vmem:[#allocation10 + $0x350] sm:$0xf0]  ;;  %v2330_v20 = vld [vmem:[#allocation10 + $0x4] sm:$0xf]  ;;  %v1896_v15 = vld [vmem:[#allocation10 + $0x1a8] sm:$0xf] }
  0x54   :  { %1131 = vmatpush.bf16.msrb.mxu0 %v1765_v27  ;;  %v2101_v19 = vor.u32 %v2434_v16, %v2098_v18  ;;  %v1682_v21 = vld [vmem:[#allocation10 + $0x10] sm:$0xf0]  ;;  %v2362_v22 = vld [vmem:[#allocation10 + $0x104] sm:$0xf]  ;;  %v2385_v16 = vld [vmem:[#allocation10 + $0x1b4] sm:$0xf0] }
  0x55   :  { %1144 = vmatpush.bf16.msrb.mxu1 %v1893_v31  ;;  %v1685_v23 = vor.u32 %v2330_v20, %v1682_v21  ;;  %v1810_v24 = vld [vmem:[#allocation10 + $0x110] sm:$0xf0]  ;;  %v2398_v26 = vld [vmem:[#allocation10 + $0x224] sm:$0xf]  ;;  %v2445_v53 = vld [vmem:[#allocation10 + $0x394] sm:$0xf0] }
  0x56   :  { %1157 = vmatpush.bf16.msrb.mxu2 %v2021_v45  ;;  %1170 = vmatpush.bf16.msrb.mxu3 %v2149_v47  ;;  %v1813_v25 = vor.u32 %v2362_v22, %v1810_v24  ;;  %v1954_v27 = vld [vmem:[#allocation10 + $0x230] sm:$0xf0]  ;;  %v2430_v28 = vld [vmem:[#allocation10 + $0x324] sm:$0xf]  ;;  %v2040_v22 = vld [vmem:[#allocation10 + $0x2c8] sm:$0xf] }
  0x57   :  { %v2082_v29 = vld [vmem:[#allocation10 + $0x330] sm:$0xf0]  ;;  %v1957_v30 = vor.u32 %v2398_v26, %v1954_v27  ;;  %v2394_v32 = vld [vmem:[#allocation10 + $0x204] sm:$0xf]  ;;  %v2168_v24 = vld [vmem:[#allocation10 + $0x3c8] sm:$0xf]  ;;  %v1897_v26 = vor.u32 %v2385_v16, %v1896_v15 }
  0x58   :  { %1132 = vmatpush.bf16.msrb.mxu0 %v1749_v39  ;;  %v2085_v31 = vor.u32 %v2430_v28, %v2082_v29  ;;  %v1938_v33 = vld [vmem:[#allocation10 + $0x210] sm:$0xf0]  ;;  %v2426_v35 = vld [vmem:[#allocation10 + $0x304] sm:$0xf]  ;;  %v2453_v27 = vld [vmem:[#allocation10 + $0x3d4] sm:$0xf0] }
  0x59   :  { %1145 = vmatpush.bf16.msrb.mxu1 %v1877_v41  ;;  %v1941_v34 = vor.u32 %v2394_v32, %v1938_v33  ;;  %v2066_v36 = vld [vmem:[#allocation10 + $0x310] sm:$0xf0]  ;;  %v1752_v28 = vld [vmem:[#allocation10 + $0x88] sm:$0xf]  ;;  %v2349_v29 = vld [vmem:[#allocation10 + $0x94] sm:$0xf0] }
  0x5a   :  { %1158 = vmatpush.bf16.msrb.mxu2 %v2005_v56  ;;  %1171 = vmatpush.bf16.msrb.mxu3 %v2133_v59  ;;  %v2069_v37 = vor.u32 %v2426_v35, %v2066_v36  ;;  %v1801_v56 = vor.u32 %v2361_v50, %v1800_v49  ;;  %v1784_v59 = vld [vmem:[#allocation10 + $0xc8] sm:$0xf]  ;;  %v2169_v35 = vor.u32 %v2453_v27, %v2168_v24  ;;  %v2413_v49 = vld [vmem:[#allocation10 + $0x294] sm:$0xf0]  ;;  %v2391_v24 = vld [vmem:[#allocation10 + $0x1ec] sm:$0xf] }
  0x5b   :  { %v1785_v4 = vor.u32 %v2357_v60, %v1784_v59  ;;  %v1753_v36 = vor.u32 %v2349_v29, %v1752_v28  ;;  %v2137_v60 = vor.u32 %v2445_v53, %v2136_v52  ;;  %v2437_v15 = vld [vmem:[#allocation10 + $0x354] sm:$0xf0]  ;;  %v1688_v16 = vld [vmem:[#allocation10 + $0x8] sm:$0xf]  ;;  %v2351_v52 = vld [vmem:[#allocation10 + $0xac] sm:$0xf] }
  0x5c   :  { %1133 = vmatpush.bf16.msrb.mxu0 %v1733_v51  ;;  %v1960_v28 = vld [vmem:[#allocation10 + $0x228] sm:$0xf]  ;;  %v2401_v29 = vld [vmem:[#allocation10 + $0x234] sm:$0xf0] }
  0x5d   :  { %1146 = vmatpush.bf16.msrb.mxu1 %v1861_v55 }
  0x5e   :  { %1159 = vmatpush.bf16.msrb.mxu2 %v1989_v5  ;;  %1172 = vmatpush.bf16.msrb.mxu3 %v2117_v7  ;;  %v2056_v5 = vld [vmem:[#allocation10 + $0x2e8] sm:$0xf] }
  0x5f   :  { %v2184_v7 = vld [vmem:[#allocation10 + $0x3e8] sm:$0xf]  ;;  %v2057_v18 = vor.u32 %v2425_v6, %v2056_v5  ;;  %v2337_v5 = vld [vmem:[#allocation10 + $0x34] sm:$0xf0] }
  0x60   :  { %1134 = vmatpush.bf16.msrb.mxu0 %v1717_v63  ;;  %v2389_v63 = vld [vmem:[#allocation10 + $0x1d4] sm:$0xf0]  ;;  %v1832_v6 = vld [vmem:[#allocation10 + $0x128] sm:$0xf] }
  0x61   :  { %1147 = vmatpush.bf16.msrb.mxu1 %v1845_v1  ;;  %v1913_v10 = vor.u32 %v2389_v63, %v1912_v62  ;;  %v1992_v62 = vld [vmem:[#allocation10 + $0x268] sm:$0xf]  ;;  %v2409_v63 = vld [vmem:[#allocation10 + $0x274] sm:$0xf0] }
  0x62   :  { %1160 = vmatpush.bf16.msrb.mxu2 %v1973_v17  ;;  %1173 = vmatpush.bf16.msrb.mxu3 %v2101_v19 }
  0x64   :  { %1135 = vmatpush.bf16.msrb.mxu0 %v1701_v11  ;;  %v2457_v11 = vld [vmem:[#allocation10 + $0x3f4] sm:$0xf0] }
  0x65   :  { %1148 = vmatpush.bf16.msrb.mxu1 %v1829_v13  ;;  %v2353_v13 = vld [vmem:[#allocation10 + $0xb4] sm:$0xf0]  ;;  %v2185_v20 = vor.u32 %v2457_v11, %v2184_v7 }
  0x66   :  { %1161 = vmatpush.bf16.msrb.mxu2 %v1957_v30  ;;  %1174 = vmatpush.bf16.msrb.mxu3 %v2085_v31  ;;  %v1769_v21 = vor.u32 %v2353_v13, %v1768_v12  ;;  %v1880_v30 = vld [vmem:[#allocation10 + $0x188] sm:$0xf]  ;;  %v2381_v31 = vld [vmem:[#allocation10 + $0x194] sm:$0xf0] }
  0x67   :  { %v2369_v7 = vld [vmem:[#allocation10 + $0x134] sm:$0xf0]  ;;  %v2104_v12 = vld [vmem:[#allocation10 + $0x348] sm:$0xf] }
  0x68   :  { %1136 = vmatpush.bf16.msrb.mxu0 %v1685_v23  ;;  %v2421_v23 = vld [vmem:[#allocation10 + $0x2d4] sm:$0xf0]  ;;  %v2105_v27 = vor.u32 %v2437_v15, %v2104_v12  ;;  %v2154_v15 = vld [vmem:[#allocation10 + $0x3b8] sm:$0xf0] }
  0x69   :  { %1149 = vmatpush.bf16.msrb.mxu1 %v1813_v25  ;;  %v2041_v33 = vor.u32 %v2421_v23, %v2040_v22  ;;  %v2405_v11 = vld [vmem:[#allocation10 + $0x254] sm:$0xf0]  ;;  %v1802_v23 = vld [vmem:[#allocation10 + $0xf8] sm:$0xf0] }
  0x6a   :  { %1162 = vmatpush.bf16.msrb.mxu2 %v1941_v34  ;;  %1175 = vmatpush.bf16.msrb.mxu3 %v2069_v37  ;;  %v2024_v37 = vld [vmem:[#allocation10 + $0x2a8] sm:$0xf] }
  0xa0   :  { %v162_v38 = vpop.f32.mrf.mxu0  ;;  %v175_v39 = vpop.f32.mrf.mxu1 }
  0xa7   :  { %v188_v40 = vpop.f32.mrf.mxu2 }
  0xa8   :  { %v201_v41 = vpop.f32.mrf.mxu3  ;;  %v164_v42 = vpop.f32.mrf.mxu0 }
  0xa9   :  { %v177_v43 = vpop.f32.mrf.mxu1  ;;  %v1736_v42 = vld [vmem:[#allocation10 + $0x68] sm:$0xf] }
  0xaa   :  { %v2345_v43 = vld [vmem:[#allocation10 + $0x74] sm:$0xf0] }
  0xab   :  { %v1737_v50 = vor.u32 %v2345_v43, %v1736_v42  ;;  %v1944_v42 = vld [vmem:[#allocation10 + $0x208] sm:$0xf]  ;;  %v2397_v43 = vld [vmem:[#allocation10 + $0x214] sm:$0xf0] }
  0xac   :  { %v1945_v53 = vor.u32 %v2397_v43, %v1944_v42  ;;  %v2335_v42 = vld [vmem:[#allocation10 + $0x2c] sm:$0xf]  ;;  %v1706_v43 = vld [vmem:[#allocation10 + $0x38] sm:$0xf0] }
  0xaf   :  { %v190_v44 = vpop.f32.mrf.mxu2 }
  0xb0   :  { %v203_v45 = vpop.f32.mrf.mxu3  ;;  %v258_v46 = vpop.f32.mrf.mxu0  ;;  %v1864_v44 = vld [vmem:[#allocation10 + $0x168] sm:$0xf] }
  0xb1   :  { %v259_v47 = vadd.f32 %v258_v46, %v162_v38  ;;  %v271_v48 = vpop.f32.mrf.mxu1  ;;  %v2417_v38 = vld [vmem:[#allocation10 + $0x2b4] sm:$0xf0] }
  0xb2   :  { %v272_v51 = vadd.f32 %v271_v48, %v175_v39  ;;  %v1881_v39 = vor.u32 %v2381_v31, %v1880_v30  ;;  %v2377_v45 = vld [vmem:[#allocation10 + $0x174] sm:$0xf0]  ;;  %v2025_v46 = vor.u32 %v2417_v38, %v2024_v37  ;;  %v2008_v48 = vld [vmem:[#allocation10 + $0x288] sm:$0xf]  ;;  %v1961_v37 = vor.u32 %v2401_v29, %v1960_v28  ;;  %v1786_v38 = vld [vmem:[#allocation10 + $0xd8] sm:$0xf0] }
  0xb3   :  { %v301_v54 = vmax.f32 %v259_v47, 0.0  ;;  %v2009_v59 = vor.u32 %v2413_v49, %v2008_v48  ;;  %v2443_v28 = vld [vmem:[#allocation10 + $0x38c] sm:$0xf]  ;;  %v2138_v29 = vld [vmem:[#allocation10 + $0x398] sm:$0xf0] }
  0xb4   :  { %v302_v55 = vmax.f32 %v272_v51, 0.0  ;;  %v1865_v51 = vor.u32 %v2377_v45, %v1864_v44  ;;  %v2072_v44 = vld [vmem:[#allocation10 + $0x308] sm:$0xf]  ;;  %v2429_v45 = vld [vmem:[#allocation10 + $0x314] sm:$0xf0] }
  0xb5   :  { %v2751_v57 = vpack.c.bf16 %v301_v54, %v301_v54  ;;  %v1720_v54 = vld [vmem:[#allocation10 + $0x48] sm:$0xf] }
  0xb6   :  { %v2753_v61 = vpack.c.bf16 %v302_v55, %v302_v55  ;;  %v2341_v55 = vld [vmem:[#allocation10 + $0x54] sm:$0xf0] }
  0xb7   :  { %v284_v0 = vpop.f32.mrf.mxu2  ;;  %1085 = vmatmul.bf16.vlgmr.msra.gmra.mxu0 %v2751_v57 }
  0xb8   :  { %v285_v1 = vadd.f32 %v284_v0, %v188_v40  ;;  %v297_v2 = vpop.f32.mrf.mxu3  ;;  %1098 = vmatmul.bf16.vlgmr.msra.gmra.mxu1 %v2753_v61  ;;  %1181 = vmatpush.bf16.msra.mxu0 %v1801_v56  ;;  %v260_v3 = vpop.f32.mrf.mxu0  ;;  %v2152_v40 = vld [vmem:[#allocation10 + $0x3a8] sm:$0xf]  ;;  %v1721_v0 = vor.u32 %v2341_v55, %v1720_v54  ;;  %v1770_v54 = vld [vmem:[#allocation10 + $0xb8] sm:$0xf0]  ;;  %v2383_v55 = vld [vmem:[#allocation10 + $0x1ac] sm:$0xf] }
  0xb9   :  { %v298_v8 = vadd.f32 %v297_v2, %v201_v41  ;;  %1194 = vmatpush.bf16.msra.mxu1 %v1929_v58  ;;  %v273_v9 = vpop.f32.mrf.mxu1  ;;  %v2449_v41 = vld [vmem:[#allocation10 + $0x3b4] sm:$0xf0]  ;;  %v1848_v56 = vld [vmem:[#allocation10 + $0x148] sm:$0xf] }
  0xba   :  { %v303_v14 = vmax.f32 %v285_v1, 0.0  ;;  %v2153_v47 = vor.u32 %v2449_v41, %v2152_v40  ;;  %v2373_v58 = vld [vmem:[#allocation10 + $0x154] sm:$0xf0]  ;;  %v2120_v2 = vld [vmem:[#allocation10 + $0x368] sm:$0xf] }
  0xbb   :  { %v304_v17 = vmax.f32 %v298_v8, 0.0  ;;  %v1849_v1 = vor.u32 %v2373_v58, %v1848_v56  ;;  %v2441_v3 = vld [vmem:[#allocation10 + $0x374] sm:$0xf0]  ;;  %v1993_v8 = vor.u32 %v2409_v63, %v1992_v62  ;;  %v1914_v40 = vld [vmem:[#allocation10 + $0x1d8] sm:$0xf0]  ;;  %v2073_v58 = vor.u32 %v2429_v45, %v2072_v44 }
  0xbc   :  { %v2757_v19 = vpack.c.bf16 %v303_v14, %v303_v14  ;;  %1182 = vmatpush.bf16.msra.mxu0 %v1785_v4  ;;  %v1704_v4 = vld [vmem:[#allocation10 + $0x28] sm:$0xf]  ;;  %v2121_v9 = vor.u32 %v2441_v3, %v2120_v2  ;;  %v1833_v14 = vor.u32 %v2369_v7, %v1832_v6  ;;  %v1898_v56 = vld [vmem:[#allocation10 + $0x1b8] sm:$0xf0]  ;;  %v2419_v62 = vld [vmem:[#allocation10 + $0x2cc] sm:$0xf] }
  0xbd   :  { %v2759_v25 = vpack.c.bf16 %v304_v17, %v304_v17  ;;  %1195 = vmatpush.bf16.msra.mxu1 %v1913_v10  ;;  %v1976_v10 = vld [vmem:[#allocation10 + $0x248] sm:$0xf]  ;;  %v1705_v13 = vor.u32 %v2337_v5, %v1704_v4  ;;  %v2333_v17 = vld [vmem:[#allocation10 + $0x14] sm:$0xf0]  ;;  %v2042_v63 = vld [vmem:[#allocation10 + $0x2d8] sm:$0xf0] }
  0xbe   :  { %1111 = vmatmul.bf16.vlgmr.msra.gmra.mxu2 %v2757_v19  ;;  %v1977_v22 = vor.u32 %v2405_v11, %v1976_v10  ;;  %v1689_v30 = vor.u32 %v2333_v17, %v1688_v16  ;;  %v2451_v2 = vld [vmem:[#allocation10 + $0x3cc] sm:$0xf]  ;;  %v2170_v3 = vld [vmem:[#allocation10 + $0x3d8] sm:$0xf0] }
  0xbf   :  { %1124 = vmatmul.bf16.vlgmr.msra.gmra.mxu3 %v2759_v25  ;;  %1207 = vmatpush.bf16.msra.mxu2 %v2057_v18  ;;  %v286_v32 = vpop.f32.mrf.mxu2  ;;  %v1816_v18 = vld [vmem:[#allocation10 + $0x108] sm:$0xf]  ;;  %v2347_v4 = vld [vmem:[#allocation10 + $0x8c] sm:$0xf]  ;;  %v1754_v5 = vld [vmem:[#allocation10 + $0x98] sm:$0xf0] }
  0xc0   :  { %1220 = vmatpush.bf16.msra.mxu3 %v2185_v20  ;;  %v299_v34 = vpop.f32.mrf.mxu3  ;;  %1183 = vmatpush.bf16.msra.mxu0 %v1769_v21  ;;  %v2365_v20 = vld [vmem:[#allocation10 + $0x114] sm:$0xf0]  ;;  %v2359_v21 = vld [vmem:[#allocation10 + $0xec] sm:$0xf]  ;;  %v2088_v32 = vld [vmem:[#allocation10 + $0x328] sm:$0xf]  ;;  %v1757_v12 = vor.u32 %v2347_v4, %v1754_v5 }
  0xc1   :  { %1196 = vmatpush.bf16.msra.mxu1 %v1897_v26  ;;  %v1930_v26 = vld [vmem:[#allocation10 + $0x1f8] sm:$0xf0]  ;;  %v1817_v31 = vor.u32 %v2365_v20, %v1816_v18  ;;  %v1805_v34 = vor.u32 %v2359_v21, %v1802_v23  ;;  %v2379_v6 = vld [vmem:[#allocation10 + $0x18c] sm:$0xf] }
  0xc2   :  { %v1882_v7 = vld [vmem:[#allocation10 + $0x198] sm:$0xf0]  ;;  %v2415_v10 = vld [vmem:[#allocation10 + $0x2ac] sm:$0xf] }
  0xc3   :  { %1208 = vmatpush.bf16.msra.mxu2 %v2041_v33  ;;  %v2433_v33 = vld [vmem:[#allocation10 + $0x334] sm:$0xf0]  ;;  %v2026_v11 = vld [vmem:[#allocation10 + $0x2b8] sm:$0xf0]  ;;  %v2343_v16 = vld [vmem:[#allocation10 + $0x6c] sm:$0xf] }
  0xc4   :  { %1221 = vmatpush.bf16.msra.mxu3 %v2169_v35  ;;  %1184 = vmatpush.bf16.msra.mxu0 %v1753_v36  ;;  %v1933_v35 = vor.u32 %v2391_v24, %v1930_v26  ;;  %v2355_v36 = vld [vmem:[#allocation10 + $0xcc] sm:$0xf]  ;;  %v2089_v41 = vor.u32 %v2433_v33, %v2088_v32  ;;  %v1738_v17 = vld [vmem:[#allocation10 + $0x78] sm:$0xf0]  ;;  %v2029_v21 = vor.u32 %v2415_v10, %v2026_v11  ;;  %v2464_v11 = vld [vmem:[#allocation11 + $0x30] sm:$0xff] }
  0xc5   :  { %1197 = vmatpush.bf16.msra.mxu1 %v1881_v39  ;;  %v2387_v39 = vld [vmem:[#allocation10 + $0x1cc] sm:$0xf]  ;;  %v1789_v48 = vor.u32 %v2355_v36, %v1786_v38  ;;  %v1866_v20 = vld [vmem:[#allocation10 + $0x178] sm:$0xf0]  ;;  %v1741_v26 = vor.u32 %v2343_v16, %v1738_v17 }
  0xc6   :  { %v1917_v49 = vor.u32 %v2387_v39, %v1914_v40  ;;  %v2375_v18 = vld [vmem:[#allocation10 + $0x16c] sm:$0xf]  ;;  %v2010_v24 = vld [vmem:[#allocation10 + $0x298] sm:$0xf0] }
  0xc7   :  { %1209 = vmatpush.bf16.msra.mxu2 %v2025_v46  ;;  %1137 = vmatmul.bf16.vlgmr.msrb.gmra.mxu0 %v2751_v57  ;;  %v2423_v46 = vld [vmem:[#allocation10 + $0x2ec] sm:$0xf]  ;;  %v1850_v33 = vld [vmem:[#allocation10 + $0x158] sm:$0xf0] }
  0xc8   :  { %1222 = vmatpush.bf16.msra.mxu3 %v2153_v47  ;;  %1150 = vmatmul.bf16.vlgmr.msrb.gmra.mxu1 %v2753_v61  ;;  %v2058_v47 = vld [vmem:[#allocation10 + $0x2f8] sm:$0xf0]  ;;  %v2411_v23 = vld [vmem:[#allocation10 + $0x28c] sm:$0xf] }
  0xc9   :  { %1185 = vmatpush.bf16.msra.mxu0 %v1737_v50  ;;  %1198 = vmatpush.bf16.msra.mxu1 %v1865_v51  ;;  %v2455_v50 = vld [vmem:[#allocation10 + $0x3ec] sm:$0xf]  ;;  %v2186_v51 = vld [vmem:[#allocation10 + $0x3f8] sm:$0xf0] }
  0xca   :  { %v2371_v32 = vld [vmem:[#allocation10 + $0x14c] sm:$0xf]  ;;  %v1834_v45 = vld [vmem:[#allocation10 + $0x138] sm:$0xf0] }
  0xcb   :  { %1210 = vmatpush.bf16.msra.mxu2 %v2009_v59  ;;  %v2061_v59 = vor.u32 %v2423_v46, %v2058_v47  ;;  %v2407_v36 = vld [vmem:[#allocation10 + $0x26c] sm:$0xf]  ;;  %v1853_v39 = vor.u32 %v2371_v32, %v1850_v33  ;;  %v2465_v4 = vld [vmem:[#allocation11 + $0x38] sm:$0xff] }
  0xcc   :  { %1223 = vmatpush.bf16.msra.mxu3 %v2137_v60  ;;  %v2189_v60 = vor.u32 %v2455_v50, %v2186_v51  ;;  %v2439_v40 = vld [vmem:[#allocation10 + $0x36c] sm:$0xf]  ;;  %v1709_v50 = vor.u32 %v2335_v42, %v1706_v43  ;;  %v2074_v10 = vld [vmem:[#allocation10 + $0x318] sm:$0xf0] }
  0xcd   :  { %1186 = vmatpush.bf16.msra.mxu0 %v1721_v0  ;;  %1199 = vmatpush.bf16.msra.mxu1 %v1849_v1  ;;  %v1773_v0 = vor.u32 %v2351_v52, %v1770_v54  ;;  %v1901_v1 = vor.u32 %v2383_v55, %v1898_v56  ;;  %v2367_v44 = vld [vmem:[#allocation10 + $0x12c] sm:$0xf]  ;;  %v1690_v55 = vld [vmem:[#allocation10 + $0x18] sm:$0xf0] }
  0xce   :  { %1163 = vmatmul.bf16.vlgmr.msrb.gmra.mxu2 %v2757_v19  ;;  %v1837_v51 = vor.u32 %v2367_v44, %v1834_v45  ;;  %v2435_v52 = vld [vmem:[#allocation10 + $0x34c] sm:$0xf]  ;;  %v2473_v16 = vld [vmem:[#allocation11 + $0x78] sm:$0xff]  ;;  %v2474_v45 = vld [vmem:[#allocation11 + $0x80] sm:$0xff] }
  0xcf   :  { %1176 = vmatmul.bf16.vlgmr.msrb.gmra.mxu3 %v2759_v25  ;;  %1211 = vmatpush.bf16.msra.mxu2 %v1993_v8  ;;  %v2045_v8 = vor.u32 %v2419_v62, %v2042_v63  ;;  %v2331_v54 = vld [vmem:[#allocation10 + $0xc] sm:$0xf]  ;;  %v1962_v63 = vld [vmem:[#allocation10 + $0x238] sm:$0xf0] }
  0xd0   :  { %1224 = vmatpush.bf16.msra.mxu3 %v2121_v9  ;;  %v2173_v9 = vor.u32 %v2451_v2, %v2170_v3  ;;  %v2363_v56 = vld [vmem:[#allocation10 + $0x10c] sm:$0xf]  ;;  %v2090_v3 = vld [vmem:[#allocation10 + $0x338] sm:$0xf0] }
  0xd1   :  { %1187 = vmatpush.bf16.msra.mxu0 %v1705_v13  ;;  %1200 = vmatpush.bf16.msra.mxu1 %v1833_v14  ;;  %v1885_v13 = vor.u32 %v2379_v6, %v1882_v7  ;;  %v2447_v14 = vld [vmem:[#allocation10 + $0x3ac] sm:$0xf]  ;;  %v2461_v17 = vld [vmem:[#allocation11 + $0x18] sm:$0xff] }
  0xd2   :  { %v2399_v62 = vld [vmem:[#allocation10 + $0x22c] sm:$0xf]  ;;  %v2477_v32 = vld [vmem:[#allocation11 + $0x98] sm:$0xff] }
  0xd3   :  { %1212 = vmatpush.bf16.msra.mxu2 %v1977_v22  ;;  %v2157_v22 = vor.u32 %v2447_v14, %v2154_v15  ;;  %v2431_v2 = vld [vmem:[#allocation10 + $0x32c] sm:$0xf]  ;;  %v1965_v5 = vor.u32 %v2399_v62, %v1962_v63  ;;  %v2462_v15 = vld [vmem:[#allocation11 + $0x20] sm:$0xff]  ;;  %v2485_v63 = vld [vmem:[#allocation11 + $0xd8] sm:$0xff] }
  0xd4   :  { %1225 = vmatpush.bf16.msra.mxu3 %v2105_v27  ;;  %v1869_v27 = vor.u32 %v2375_v18, %v1866_v20  ;;  %v2093_v6 = vor.u32 %v2431_v2, %v2090_v3  ;;  %v2395_v7 = vld [vmem:[#allocation10 + $0x20c] sm:$0xf]  ;;  %v2460_v18 = vld [vmem:[#allocation11 + $0x10] sm:$0xff] }
  0xd5   :  { %1188 = vmatpush.bf16.msra.mxu0 %v1689_v30  ;;  %1201 = vmatpush.bf16.msra.mxu1 %v1817_v31  ;;  %v2339_v30 = vld [vmem:[#allocation10 + $0x4c] sm:$0xf]  ;;  %v1722_v31 = vld [vmem:[#allocation10 + $0x58] sm:$0xf0] }
  0xd6   :  { %v1725_v38 = vor.u32 %v2339_v30, %v1722_v31  ;;  %v2463_v14 = vld [vmem:[#allocation11 + $0x28] sm:$0xff]  ;;  %v2466_v30 = vld [vmem:[#allocation11 + $0x40] sm:$0xff] }
  0xd7   :  { %1213 = vmatpush.bf16.msra.mxu2 %v1961_v37  ;;  %v1994_v37 = vld [vmem:[#allocation10 + $0x278] sm:$0xf0]  ;;  %v2471_v20 = vld [vmem:[#allocation11 + $0x68] sm:$0xff]  ;;  %v2478_v31 = vld [vmem:[#allocation11 + $0xa0] sm:$0xff] }
  0xd8   :  { %1226 = vmatpush.bf16.msra.mxu3 %v2089_v41  ;;  %1189 = vmatmul.bf16.vlgmr.msra.gmra.mxu0 %v2751_v57  ;;  %v2122_v41 = vld [vmem:[#allocation10 + $0x378] sm:$0xf0]  ;;  %v1997_v46 = vor.u32 %v2407_v36, %v1994_v37 }
  0xd9   :  { %1233 = vmatpush.bf16.msrb.mxu0 %v1805_v34  ;;  %1246 = vmatpush.bf16.msrb.mxu1 %v1933_v35  ;;  %v2013_v34 = vor.u32 %v2411_v23, %v2010_v24  ;;  %v2141_v35 = vor.u32 %v2443_v28, %v2138_v29  ;;  %v2125_v47 = vor.u32 %v2439_v40, %v2122_v41  ;;  %v2468_v23 = vld [vmem:[#allocation11 + $0x50] sm:$0xff]  ;;  %v2475_v40 = vld [vmem:[#allocation11 + $0x88] sm:$0xff] }
  0xda   :  { %1202 = vmatmul.bf16.vlgmr.msra.gmra.mxu1 %v2753_v61  ;;  %v2480_v24 = vld [vmem:[#allocation11 + $0xb0] sm:$0xff] }
  0xdb   :  { %1214 = vmatpush.bf16.msra.mxu2 %v1945_v53  ;;  %v2106_v53 = vld [vmem:[#allocation10 + $0x358] sm:$0xf0] }
  0xdc   :  { %1227 = vmatpush.bf16.msra.mxu3 %v2073_v58  ;;  %v1818_v58 = vld [vmem:[#allocation10 + $0x118] sm:$0xf0] }
  0xdd   :  { %1234 = vmatpush.bf16.msrb.mxu0 %v1789_v48  ;;  %1247 = vmatpush.bf16.msrb.mxu1 %v1917_v49  ;;  %v2403_v48 = vld [vmem:[#allocation10 + $0x24c] sm:$0xf]  ;;  %v1978_v49 = vld [vmem:[#allocation10 + $0x258] sm:$0xf0] }
  0xde   :  { %1215 = vmatmul.bf16.vlgmr.msra.gmra.mxu2 %v2757_v19 }
  0xdf   :  { %1259 = vmatpush.bf16.msrb.mxu2 %v2061_v59  ;;  %1228 = vmatmul.bf16.vlgmr.msra.gmra.mxu3 %v2759_v25  ;;  %v1981_v59 = vor.u32 %v2403_v48, %v1978_v49 }
  0xe0   :  { %1272 = vmatpush.bf16.msrb.mxu3 %v2189_v60  ;;  %v2109_v60 = vor.u32 %v2435_v52, %v2106_v53  ;;  %v2487_v53 = vld [vmem:[#allocation11 + $0xe8] sm:$0xff] }
  0xe1   :  { %1235 = vmatpush.bf16.msrb.mxu0 %v1773_v0  ;;  %1248 = vmatpush.bf16.msrb.mxu1 %v1901_v1  ;;  %v1693_v0 = vor.u32 %v2331_v54, %v1690_v55  ;;  %v1821_v1 = vor.u32 %v2363_v56, %v1818_v58 }
  0xe3   :  { %1260 = vmatpush.bf16.msrb.mxu2 %v2045_v8  ;;  %v1946_v8 = vld [vmem:[#allocation10 + $0x218] sm:$0xf0] }
  0xe4   :  { %1273 = vmatpush.bf16.msrb.mxu3 %v2173_v9  ;;  %v2427_v9 = vld [vmem:[#allocation10 + $0x30c] sm:$0xf] }
  0xe5   :  { %1236 = vmatpush.bf16.msrb.mxu0 %v1757_v12  ;;  %1249 = vmatpush.bf16.msrb.mxu1 %v1885_v13  ;;  %v1949_v12 = vor.u32 %v2395_v7, %v1946_v8  ;;  %v2077_v13 = vor.u32 %v2427_v9, %v2074_v10  ;;  %v2483_v8 = vld [vmem:[#allocation11 + $0xc8] sm:$0xff] }
  0xe7   :  { %1261 = vmatpush.bf16.msrb.mxu2 %v2029_v21  ;;  %v2458_v21 = vld [vmem:[#allocation11] sm:$0xff] }
  0xe8   :  { %1274 = vmatpush.bf16.msrb.mxu3 %v2157_v22  ;;  %v2470_v22 = vld [vmem:[#allocation11 + $0x60] sm:$0xff] }
  0xe9   :  { %1237 = vmatpush.bf16.msrb.mxu0 %v1741_v26  ;;  %1250 = vmatpush.bf16.msrb.mxu1 %v1869_v27  ;;  %v2467_v26 = vld [vmem:[#allocation11 + $0x48] sm:$0xff] }
  0xea   :  { %v2479_v27 = vld [vmem:[#allocation11 + $0xa8] sm:$0xff] }
  0xeb   :  { %1262 = vmatpush.bf16.msrb.mxu2 %v2013_v34 }
  0xec   :  { %1275 = vmatpush.bf16.msrb.mxu3 %v2141_v35  ;;  %v2476_v35 = vld [vmem:[#allocation11 + $0x90] sm:$0xff] }
  0xed   :  { %1238 = vmatpush.bf16.msrb.mxu0 %v1725_v38  ;;  %1251 = vmatpush.bf16.msrb.mxu1 %v1853_v39 }
  0xef   :  { %1263 = vmatpush.bf16.msrb.mxu2 %v1997_v46  ;;  %v2489_v46 = vld [vmem:[#allocation11 + $0xf8] sm:$0xff] }
  0xf0   :  { %1276 = vmatpush.bf16.msrb.mxu3 %v2125_v47 }
  0xf1   :  { %1239 = vmatpush.bf16.msrb.mxu0 %v1709_v50  ;;  %1252 = vmatpush.bf16.msrb.mxu1 %v1837_v51  ;;  %v2488_v50 = vld [vmem:[#allocation11 + $0xf0] sm:$0xff] }
  0xf3   :  { %1264 = vmatpush.bf16.msrb.mxu2 %v1981_v59  ;;  %v2486_v59 = vld [vmem:[#allocation11 + $0xe0] sm:$0xff] }
  0xf4   :  { %1277 = vmatpush.bf16.msrb.mxu3 %v2109_v60 }
  0xf5   :  { %1240 = vmatpush.bf16.msrb.mxu0 %v1693_v0  ;;  %1253 = vmatpush.bf16.msrb.mxu1 %v1821_v1 }
  0xf7   :  { %1265 = vmatpush.bf16.msrb.mxu2 %v1965_v5  ;;  %v2484_v5 = vld [vmem:[#allocation11 + $0xd0] sm:$0xff] }
  0xf8   :  { %1278 = vmatpush.bf16.msrb.mxu3 %v2093_v6  ;;  %1241 = vmatmul.bf16.vlgmr.msrb.gmra.mxu0 %v2751_v57  ;;  %v2472_v57 = vld [vmem:[#allocation11 + $0x70] sm:$0xff] }
  0xf9   :  { %1549 = vmatpush.bf16.msra.mxu0 %v2465_v4  ;;  %1254 = vmatmul.bf16.vlgmr.msrb.gmra.mxu1 %v2753_v61  ;;  %v2459_v61 = vld [vmem:[#allocation11 + $0x8] sm:$0xff] }
  0xfa   :  { %1562 = vmatpush.bf16.msra.mxu1 %v2473_v16 }
  0xfb   :  { %1266 = vmatpush.bf16.msrb.mxu2 %v1949_v12 }
  0xfc   :  { %1279 = vmatpush.bf16.msrb.mxu3 %v2077_v13  ;;  %v2482_v13 = vld [vmem:[#allocation11 + $0xc0] sm:$0xff] }
  0xfd   :  { %1550 = vmatpush.bf16.msra.mxu0 %v2464_v11 }
  0xfe   :  { %1267 = vmatmul.bf16.vlgmr.msrb.gmra.mxu2 %v2757_v19  ;;  %1563 = vmatpush.bf16.msra.mxu1 %v2472_v57  ;;  %v2469_v19 = vld [vmem:[#allocation11 + $0x58] sm:$0xff] }
  0xff   :  { %1280 = vmatmul.bf16.vlgmr.msrb.gmra.mxu3 %v2759_v25  ;;  %v2481_v25 = vld [vmem:[#allocation11 + $0xb8] sm:$0xff] }
 0x100   :  { %1575 = vmatpush.bf16.msra.mxu2 %v2481_v25  ;;  %1588 = vmatpush.bf16.msra.mxu3 %v2489_v46 }
 0x101   :  { %1551 = vmatpush.bf16.msra.mxu0 %v2463_v14 }
 0x102   :  { %1564 = vmatpush.bf16.msra.mxu1 %v2471_v20 }
 0x104   :  { %1576 = vmatpush.bf16.msra.mxu2 %v2480_v24  ;;  %1589 = vmatpush.bf16.msra.mxu3 %v2488_v50 }
 0x105   :  { %1552 = vmatpush.bf16.msra.mxu0 %v2462_v15 }
 0x106   :  { %1565 = vmatpush.bf16.msra.mxu1 %v2470_v22 }
 0x108   :  { %1577 = vmatpush.bf16.msra.mxu2 %v2479_v27  ;;  %1590 = vmatpush.bf16.msra.mxu3 %v2487_v53 }
 0x109   :  { %1553 = vmatpush.bf16.msra.mxu0 %v2461_v17 }
 0x10a   :  { %1566 = vmatpush.bf16.msra.mxu1 %v2469_v19 }
 0x10c   :  { %1578 = vmatpush.bf16.msra.mxu2 %v2478_v31  ;;  %1591 = vmatpush.bf16.msra.mxu3 %v2486_v59 }
 0x10d   :  { %1554 = vmatpush.bf16.msra.mxu0 %v2460_v18 }
 0x10e   :  { %1567 = vmatpush.bf16.msra.mxu1 %v2468_v23 }
 0x110   :  { %1579 = vmatpush.bf16.msra.mxu2 %v2477_v32  ;;  %1592 = vmatpush.bf16.msra.mxu3 %v2485_v63 }
 0x111   :  { %1555 = vmatpush.bf16.msra.mxu0 %v2459_v61 }
 0x112   :  { %1568 = vmatpush.bf16.msra.mxu1 %v2467_v26 }
 0x114   :  { %1580 = vmatpush.bf16.msra.mxu2 %v2476_v35  ;;  %1593 = vmatpush.bf16.msra.mxu3 %v2484_v5 }
 0x115   :  { %1556 = vmatpush.bf16.msra.mxu0 %v2458_v21 }
 0x116   :  { %1569 = vmatpush.bf16.msra.mxu1 %v2466_v30 }
 0x118   :  { %1581 = vmatpush.bf16.msra.mxu2 %v2475_v40  ;;  %1594 = vmatpush.bf16.msra.mxu3 %v2483_v8 }
 0x11c   :  { %1582 = vmatpush.bf16.msra.mxu2 %v2474_v45  ;;  %1595 = vmatpush.bf16.msra.mxu3 %v2482_v13 }
 0x134   :  { %v1086_v28 = vpop.f32.mrf.mxu0 }
 0x135   :  { %v1099_v29 = vpop.f32.mrf.mxu1 }
 0x136   :  { %v1100_v36 = vadd.f32 %v1099_v29, %v1086_v28 }
 0x13c   :  { %v1088_v33 = vpop.f32.mrf.mxu0 }
 0x13d   :  { %v1101_v34 = vpop.f32.mrf.mxu1 }
 0x141   :  { %v1112_v37 = vpop.f32.mrf.mxu2 }
 0x142   :  { %v1113_v38 = vadd.f32 %v1112_v37, %v1100_v36  ;;  %v1125_v39 = vpop.f32.mrf.mxu3 }
 0x144   :  { %v1126_v41 = vadd.f32 %v1125_v39, %v1113_v38  ;;  %v1138_v42 = vpop.f32.mrf.mxu0 }
 0x145   :  { %v1151_v43 = vpop.f32.mrf.mxu1 }
 0x146   :  { %v1285_v44 = vmax.f32 %v1126_v41, 0.0  ;;  %v1152_v54 = vadd.f32 %v1151_v43, %v1138_v42 }
 0x148   :  { %v1289_v47 = vpack.c.bf16 %v1285_v44, %v1285_v44 }
 0x149   :  { %v1114_v48 = vpop.f32.mrf.mxu2 }
 0x14a   :  { %v1127_v49 = vpop.f32.mrf.mxu3  ;;  %1557 = vmatmul.bf16.vlgmr.msra.gmra.mxu0 %v1289_v47 }
 0x14c   :  { %v1140_v51 = vpop.f32.mrf.mxu0 }
 0x14d   :  { %v1153_v52 = vpop.f32.mrf.mxu1 }
 0x151   :  { %v1164_v55 = vpop.f32.mrf.mxu2 }
 0x152   :  { %v1165_v56 = vadd.f32 %v1164_v55, %v1152_v54  ;;  %v1177_v58 = vpop.f32.mrf.mxu3 }
 0x154   :  { %v1178_v60 = vadd.f32 %v1177_v58, %v1165_v56 }
 0x155   :  { %v1190_v62 = vpop.f32.mrf.mxu0 }
 0x156   :  { %v1286_v0 = vmax.f32 %v1178_v60, 0.0 }
 0x157   :  { %v1203_v1 = vpop.f32.mrf.mxu1 }
 0x158   :  { %v1290_v2 = vpack.c.bf16 %v1286_v0, %v1286_v0  ;;  %v1204_v9 = vadd.f32 %v1203_v1, %v1190_v62 }
 0x159   :  { %v1166_v3 = vpop.f32.mrf.mxu2 }
 0x15a   :  { %v1179_v4 = vpop.f32.mrf.mxu3  ;;  %1570 = vmatmul.bf16.vlgmr.msra.gmra.mxu1 %v1290_v2 }
 0x15d   :  { %v1192_v6 = vpop.f32.mrf.mxu0 }
 0x15f   :  { %v1205_v7 = vpop.f32.mrf.mxu1 }
 0x161   :  { %v1216_v10 = vpop.f32.mrf.mxu2 }
 0x162   :  { %v1229_v11 = vpop.f32.mrf.mxu3  ;;  %v1217_v12 = vadd.f32 %v1216_v10, %v1204_v9 }
 0x164   :  { %v1230_v14 = vadd.f32 %v1229_v11, %v1217_v12 }
 0x166   :  { %v1287_v15 = vmax.f32 %v1230_v14, 0.0 }
 0x168   :  { %v1291_v16 = vpack.c.bf16 %v1287_v15, %v1287_v15 }
 0x169   :  { %v1218_v17 = vpop.f32.mrf.mxu2 }
 0x16a   :  { %v1231_v18 = vpop.f32.mrf.mxu3  ;;  %1583 = vmatmul.bf16.vlgmr.msra.gmra.mxu2 %v1291_v16 }
 0x175   :  { %v1242_v57 = vpop.f32.mrf.mxu0 }
 0x176   :  { %v1255_v61 = vpop.f32.mrf.mxu1 }
 0x177   :  { %v1256_v22 = vadd.f32 %v1255_v61, %v1242_v57 }
 0x17d   :  { %v1244_v20 = vpop.f32.mrf.mxu0 }
 0x17e   :  { %v1257_v21 = vpop.f32.mrf.mxu1 }
 0x181   :  { %v1268_v19 = vpop.f32.mrf.mxu2 }
 0x182   :  { %v1269_v25 = vadd.f32 %v1268_v19, %v1256_v22  ;;  %v1281_v23 = vpop.f32.mrf.mxu3 }
 0x184   :  { %v1282_v24 = vadd.f32 %v1281_v23, %v1269_v25 }
 0x186   :  { %v1288_v26 = vmax.f32 %v1282_v24, 0.0 }
 0x188   :  { %v1292_v27 = vpack.c.bf16 %v1288_v26, %v1288_v26 }
 0x189   :  { %v1270_v28 = vpop.f32.mrf.mxu2 }
 0x18a   :  { %v1283_v29 = vpop.f32.mrf.mxu3  ;;  %1596 = vmatmul.bf16.vlgmr.msra.gmra.mxu3 %v1292_v27 }
 0x1c7   :  { %v1558_v30 = vpop.f32.mrf.mxu0 }
 0x1cf   :  { %v1560_v31 = vpop.f32.mrf.mxu0 }
 0x1d7   :  { %v1571_v32 = vpop.f32.mrf.mxu1 }
 0x1d8   :  { %v1572_v36 = vadd.f32 %v1571_v32, %v1558_v30 }
 0x1df   :  { %v1573_v33 = vpop.f32.mrf.mxu1 }
 0x1ed   :  { %v1584_v34 = vpop.f32.mrf.mxu2 }
 0x1ee   :  { %v1585_v37 = vadd.f32 %v1584_v34, %v1572_v36 }
 0x1f5   :  { %v1586_v35 = vpop.f32.mrf.mxu2 }
 0x20d   :  { %v1597_v38 = vpop.f32.mrf.mxu3 }
 0x20e   :  { %v1598_v39 = vadd.f32 %v1597_v38, %v1585_v37 }
 0x210   :  { %1601 = vst [vmem:[#allocation13] sm:$0xff] %v1598_v39 }
 0x211   :  { %1612 = dma.vmem_to_hbm [thread:$0]  %s1608_s5, 128, %s1610_s29, [#allocation4]  }
 0x215   :  { %v1599_v40 = vpop.f32.mrf.mxu3 }
 0x216   :  { %2677 = dma.done.wait [#allocation4], 128  }
 0x217   :  { %2678 = vsyncadd [#allocation4], 4294967168 }
 0x218   :  { %1617 = vsyncpa [#allocation3], 1 }
 0x219   :  { %1618 = vsyncpa [#allocation6], 1 }
 0x21a   :  { %1619 = vsyncpa [#allocation9], 1 }
 0x21b   :  { %1620 = vsyncpa [#allocation12], 1 }
 0x21c   :  { %1621 = vsyncpa [#allocation4], 1 }

</bundles_post_ra>
